<compile_context>
chip_gen: v7x
topology: tpu7x:2x2x1
jax: 0.10.0
libtpu: 0.0.40
codegen_flags: <defaults>
</compile_context>

<pallas_src>
import functools

import jax
import jax.numpy as jnp
from jax.experimental import pallas as pl
from jax.experimental.pallas import tpu as pltpu


def _round_up(n, m):
    return ((n + m - 1) // m) * m


def _sublane_multiple(dtype):
    """Sublane quantum: 8 for 4-byte dtypes, 16 for 2-byte, 32 for 1-byte."""
    return 8 * (4 // jnp.dtype(dtype).itemsize)


def _apply_output_activation(y, activation):
    if activation == "sigmoid":
        return jax.nn.sigmoid(y)
    if activation == "relu":
        return jnp.maximum(y, 0.0)
    if activation == "softplus":
        return jax.nn.softplus(y)
    if activation == "exp":
        return jnp.exp(y)
    if activation == "linear":
        return y
    raise ValueError(f"unknown activation: {activation}")


def _fused_mlp_kernel(x_ref, *refs, num_hidden, output_activation, out_chunk):
    """Whole MLP on one (tb, *) activation tile.

    refs = (w0, b0, ..., wL, bL, o).  Weights are already stored in the MXU
    compute dtype (no in-kernel casts); biases are f32 and added to the f32
    accumulator.  The inter-layer activation is carried in compute dtype.
    """
    o_ref = refs[-1]
    params = refs[:-1]

    h = x_ref[...]                                  # compute dtype
    for li in range(num_hidden):
        w = params[2 * li][...]                     # (k, n)  compute dtype
        b = params[2 * li + 1][...]                 # (1, n)  f32, broadcasts
        y = jnp.dot(h, w, preferred_element_type=jnp.float32) + b
        h = jnp.maximum(y, 0.0).astype(w.dtype)     # ReLU; carry in compute dtype

    # Output layer, chunked over the lane (output-feature) dim so a wide
    # output never spills as one huge (tb, out_pad) f32 value.
    w_ref = params[2 * num_hidden]
    b_ref = params[2 * num_hidden + 1]
    out_pad = o_ref.shape[-1]
    for c0 in range(0, out_pad, out_chunk):
        c1 = min(c0 + out_chunk, out_pad)
        y = (jnp.dot(h, w_ref[:, c0:c1], preferred_element_type=jnp.float32)
             + b_ref[:, c0:c1])
        o_ref[:, c0:c1] = _apply_output_activation(
            y, output_activation).astype(o_ref.dtype)


def fused_mlp_forward(x, weights, biases, *, output_activation,
                      compute_dtype=jnp.bfloat16, batch_tile=256,
                      out_chunk=512, single_buffer_params=None):
    """y = act_out(... relu(x @ W0 + b0) ... @ Wlast + blast).

    weights[i]: (k_pad, n_pad) in compute_dtype (zero-padded, pre-cast).
    biases[i]:  (1, n_pad) f32 (zero-padded).
    x: unpadded (B, in_dim) array.
    """
    B, in_dim = x.shape
    in_pad = weights[0].shape[0]
    out_pad = weights[-1].shape[1]
    cdt = jnp.dtype(compute_dtype)

    # Batch tiling: sublane-aligned tile; ensure >= 2 grid steps when the batch
    # allows so both v7x TensorCores get work.
    balign = _sublane_multiple(cdt)
    tb = min(batch_tile, _round_up(B, balign))
    if _round_up(B, tb) // tb < 2 and B > balign:
        tb = _round_up((B + 1) // 2, balign)
    b_pad = _round_up(B, tb)

    # Pad the input once, directly in compute dtype (single XLA pad op).
    x_p = jnp.pad(x.astype(cdt), ((0, b_pad - B), (0, in_pad - in_dim)))

    num_hidden = len(weights) - 1
    out_chunk = min(_round_up(out_chunk, 128), out_pad)

    kernel = functools.partial(
        _fused_mlp_kernel,
        num_hidden=num_hidden,
        output_activation=output_activation,
        out_chunk=out_chunk,
    )

    # Advisory cost estimate: lets XLA overlap the wrapper pad/slice ops with
    # the custom call.
    flops = sum(2 * b_pad * w.shape[0] * w.shape[1] for w in weights)
    transc_per = {"sigmoid": 1, "softplus": 2, "exp": 1}.get(output_activation, 0)
    param_bytes = sum(w.size * w.dtype.itemsize + b.size * b.dtype.itemsize
                      for w, b in zip(weights, biases))
    cost = pl.CostEstimate(
        flops=flops,
        transcendentals=transc_per * b_pad * out_pad,
        bytes_accessed=(x_p.size * x_p.dtype.itemsize + param_bytes
                        + b_pad * out_pad * 4),
    )

    def run(single_buffer):
        # Constant-index (VMEM-resident) weight/bias blocks don't need double
        # buffering; Buffered(1) halves their VMEM footprint.
        param_kw = {"pipeline_mode": pl.Buffered(1)} if single_buffer else {}

        in_specs = [pl.BlockSpec((tb, in_pad), lambda i: (i, 0))]
        args = [x_p]
        for w, b in zip(weights, biases):
            in_specs.append(pl.BlockSpec(w.shape, lambda i: (0, 0), **param_kw))
            in_specs.append(pl.BlockSpec(b.shape, lambda i: (0, 0), **param_kw))
            args.append(w)
            args.append(b)

        # Explicit VMEM budget: params (1 or 2 buffers) + double-buffered I/O
        # tiles + headroom, capped at 64 MiB so the same config fits v7x.
        io_bytes = 2 * (tb * in_pad * cdt.itemsize + tb * out_pad * 4)
        needed = param_bytes * (1 if single_buffer else 2) + io_bytes
        vmem_limit = int(min(max(2 * needed + (8 << 20), 32 << 20), 64 << 20))

        return pl.pallas_call(
            kernel,
            out_shape=jax.ShapeDtypeStruct((b_pad, out_pad), jnp.float32),
            grid=(b_pad // tb,),
            in_specs=in_specs,
            out_specs=pl.BlockSpec((tb, out_pad), lambda i: (i, 0)),
            compiler_params=pltpu.CompilerParams(
                dimension_semantics=("parallel",),
                vmem_limit_bytes=vmem_limit,
            ),
            cost_estimate=cost,
        )(*args)

    if single_buffer_params is None:
        try:
            return jax.block_until_ready(run(True))
        except Exception:
            # Fallback if Buffered(1) pipeline mode is rejected on this build.
            return run(False)
    return run(single_buffer_params)


class DecoderFCPallas:
    """JAX/Pallas port of DecoderFC (all layers fused into one kernel)."""

    def __init__(self, output_dim, latent_dim=10, hidden_dim=256, num_layers=1,
                 output_activation="linear", key=None,
                 compute_dtype=jnp.bfloat16, batch_tile=256, out_chunk=512):
        self.output_activation = output_activation
        self.num_layers = num_layers
        self.latent_dim = latent_dim
        self.hidden_dim = hidden_dim
        self.output_dim = output_dim
        self.compute_dtype = jnp.dtype(compute_dtype)
        self.batch_tile = batch_tile
        self.out_chunk = out_chunk
        if key is None:
            key = jax.random.PRNGKey(0)

        dims = [latent_dim] + [hidden_dim] * num_layers + [output_dim]
        self.layer_dims = list(zip(dims[:-1], dims[1:]))

        k_align = _sublane_multiple(self.compute_dtype)

        # f32 master copies (reference path) + padded, pre-cast kernel copies.
        # Only the first layer's K dim gets sublane padding; hidden/output
        # (lane) dims are padded to 128 for lane-dense matmuls and stores.
        self.weights_f32, self.biases_f32 = [], []
        self.weights_p, self.biases_p = [], []
        for li, (d_in, d_out) in enumerate(self.layer_dims):
            key, kw, kb = jax.random.split(key, 3)
            bound = 1.0 / float(d_in) ** 0.5
            w = jax.random.uniform(kw, (d_in, d_out), jnp.float32, -bound, bound)
            b = jax.random.uniform(kb, (1, d_out), jnp.float32, -bound, bound)
            self.weights_f32.append(w)
            self.biases_f32.append(b)

            in_pad = _round_up(d_in, k_align if li == 0 else 128)
            out_pad = _round_up(d_out, 128)
            w_p = jnp.pad(w, ((0, in_pad - d_in), (0, out_pad - d_out)))
            b_p = jnp.pad(b, ((0, 0), (0, out_pad - d_out)))
            # Pre-cast weights once to the MXU compute dtype (no in-kernel
            # casts); biases stay f32 (tiny; added to the f32 accumulator).
            self.weights_p.append(w_p.astype(self.compute_dtype))
            self.biases_p.append(b_p)

    def __call__(self, x):
        B = x.shape[0]
        out = fused_mlp_forward(
            x, self.weights_p, self.biases_p,
            output_activation=self.output_activation,
            compute_dtype=self.compute_dtype,
            batch_tile=self.batch_tile,
            out_chunk=self.out_chunk,
        )
        return out[:B, : self.output_dim]


def _reference_forward(model, x):
    """Pure-JAX f32 reference (unpadded master weights)."""
    h = x
    last = len(model.weights_f32) - 1
    for li, (w, b) in enumerate(zip(model.weights_f32, model.biases_f32)):
        y = h @ w + b
        if li < last:
            h = jnp.maximum(y, 0.0)
        else:
            h = _apply_output_activation(y, model.output_activation)
    return h


if __name__ == "__main__":
    key = jax.random.PRNGKey(0)
    key, kx, kp = jax.random.split(key, 3)

    batch = 64
    latent_dim = 16
    hidden_dim = 32
    output_dim = 200   # pads to 256 lanes -> exercises the output-chunk loop
    num_layers = 2

    x = jax.random.normal(kx, (batch, latent_dim), jnp.float32)

    # Strict f32 path (multi-step batch grid, 128-wide output chunks).
    model_f32 = DecoderFCPallas(
        output_dim=output_dim, latent_dim=latent_dim, hidden_dim=hidden_dim,
        num_layers=num_layers, output_activation="sigmoid", key=kp,
        compute_dtype=jnp.float32, batch_tile=16, out_chunk=128)
    out_f32 = jax.block_until_ready(model_f32(x))
    ref = _reference_forward(model_f32, x)
    assert out_f32.shape == (batch, output_dim)
    assert jnp.allclose(out_f32, ref, atol=1e-5, rtol=1e-5), "f32 path mismatch"

    # Default bf16 MXU fast path (pre-cast weights, bf16 activation carry,
    # f32 accumulation) -- checked loosely against the f32 reference.
    model_bf16 = DecoderFCPallas(
        output_dim=output_dim, latent_dim=latent_dim, hidden_dim=hidden_dim,
        num_layers=num_layers, output_activation="sigmoid", key=kp,
        compute_dtype=jnp.bfloat16)
    out_bf16 = jax.block_until_ready(model_bf16(x))
    ref_bf16 = _reference_forward(model_bf16, x)
    assert out_bf16.shape == (batch, output_dim)
    assert jnp.allclose(out_bf16, ref_bf16, atol=5e-2), "bf16 path mismatch"

    print("KERNEL_OK")
</pallas_src>

<mosaic_0001>
module attributes {stable_mosaic.version = 11 : i64} {
  func.func @_fused_mlp_kernel(%arg0: i32, %arg1: memref<16x16xf32, #tpu.memory_space<vmem>>, %arg2: memref<16x128xf32, #tpu.memory_space<vmem>>, %arg3: memref<1x128xf32, #tpu.memory_space<vmem>>, %arg4: memref<128x128xf32, #tpu.memory_space<vmem>>, %arg5: memref<1x128xf32, #tpu.memory_space<vmem>>, %arg6: memref<128x256xf32, #tpu.memory_space<vmem>>, %arg7: memref<1x256xf32, #tpu.memory_space<vmem>>, %arg8: memref<16x256xf32, #tpu.memory_space<vmem>>) attributes {dimension_semantics = [#tpu.dimension_semantics<parallel>], iteration_bounds = array<i64: 4>, scalar_prefetch = 0 : i64, scratch_operands = 0 : i64, tpu.core_type = #tpu.core_type<tc>, window_params = [{transform_indices = @transform_0, window_bounds = array<i64: 16, 16>}, {pipeline_mode = #tpu.pipeline_mode<synchronous>, transform_indices = @transform_1, window_bounds = array<i64: 16, 128>}, {pipeline_mode = #tpu.pipeline_mode<synchronous>, transform_indices = @transform_2, window_bounds = array<i64: 1, 128>}, {pipeline_mode = #tpu.pipeline_mode<synchronous>, transform_indices = @transform_3, window_bounds = array<i64: 128, 128>}, {pipeline_mode = #tpu.pipeline_mode<synchronous>, transform_indices = @transform_4, window_bounds = array<i64: 1, 128>}, {pipeline_mode = #tpu.pipeline_mode<synchronous>, transform_indices = @transform_5, window_bounds = array<i64: 128, 256>}, {pipeline_mode = #tpu.pipeline_mode<synchronous>, transform_indices = @transform_6, window_bounds = array<i64: 1, 256>}, {transform_indices = @transform_7, window_bounds = array<i64: 16, 256>}]} {
    %c0 = arith.constant 0 : index
    %c0_0 = arith.constant 0 : index
    %0 = vector.load %arg1[%c0, %c0_0] : memref<16x16xf32, #tpu.memory_space<vmem>>, vector<16x16xf32>
    %c0_1 = arith.constant 0 : index
    %c0_2 = arith.constant 0 : index
    %1 = vector.load %arg2[%c0_1, %c0_2] : memref<16x128xf32, #tpu.memory_space<vmem>>, vector<16x128xf32>
    %c0_3 = arith.constant 0 : index
    %c0_4 = arith.constant 0 : index
    %2 = vector.load %arg3[%c0_3, %c0_4] : memref<1x128xf32, #tpu.memory_space<vmem>>, vector<1x128xf32>
    %cst = arith.constant dense<0.000000e+00> : vector<16x128xf32>
    %3 = tpu.matmul %0, %1, %cst {dimension_numbers = #tpu.dot_dimension_numbers<[1], [0], [0], [1], [0, 0, 1, 1], [], []>} : vector<16x16xf32>, vector<16x128xf32>, vector<16x128xf32> -> vector<16x128xf32>
    %4 = vector.broadcast %2 : vector<1x128xf32> to vector<16x128xf32>
    %5 = arith.addf %3, %4 : vector<16x128xf32>
    %cst_5 = arith.constant 0.000000e+00 : f32
    %6 = vector.broadcast %cst_5 : f32 to vector<16x128xf32>
    %7 = arith.maximumf %5, %6 : vector<16x128xf32>
    %c0_6 = arith.constant 0 : index
    %c0_7 = arith.constant 0 : index
    %8 = vector.load %arg4[%c0_6, %c0_7] : memref<128x128xf32, #tpu.memory_space<vmem>>, vector<128x128xf32>
    %c0_8 = arith.constant 0 : index
    %c0_9 = arith.constant 0 : index
    %9 = vector.load %arg5[%c0_8, %c0_9] : memref<1x128xf32, #tpu.memory_space<vmem>>, vector<1x128xf32>
    %cst_10 = arith.constant dense<0.000000e+00> : vector<16x128xf32>
    %10 = tpu.matmul %7, %8, %cst_10 {dimension_numbers = #tpu.dot_dimension_numbers<[1], [0], [0], [1], [0, 0, 1, 1], [], []>} : vector<16x128xf32>, vector<128x128xf32>, vector<16x128xf32> -> vector<16x128xf32>
    %11 = vector.broadcast %9 : vector<1x128xf32> to vector<16x128xf32>
    %12 = arith.addf %10, %11 : vector<16x128xf32>
    %cst_11 = arith.constant 0.000000e+00 : f32
    %13 = vector.broadcast %cst_11 : f32 to vector<16x128xf32>
    %14 = arith.maximumf %12, %13 : vector<16x128xf32>
    %c0_12 = arith.constant 0 : index
    %c0_13 = arith.constant 0 : index
    %15 = vector.load %arg6[%c0_12, %c0_13] : memref<128x256xf32, #tpu.memory_space<vmem>>, vector<128x128xf32>
    %cst_14 = arith.constant dense<0.000000e+00> : vector<16x128xf32>
    %16 = tpu.matmul %14, %15, %cst_14 {dimension_numbers = #tpu.dot_dimension_numbers<[1], [0], [0], [1], [0, 0, 1, 1], [], []>} : vector<16x128xf32>, vector<128x128xf32>, vector<16x128xf32> -> vector<16x128xf32>
    %c0_15 = arith.constant 0 : index
    %c0_16 = arith.constant 0 : index
    %17 = vector.load %arg7[%c0_15, %c0_16] : memref<1x256xf32, #tpu.memory_space<vmem>>, vector<1x128xf32>
    %18 = vector.broadcast %17 : vector<1x128xf32> to vector<16x128xf32>
    %19 = arith.addf %16, %18 : vector<16x128xf32>
    %20 = arith.negf %19 : vector<16x128xf32>
    %21 = math.exp %20 : vector<16x128xf32>
    %cst_17 = arith.constant 1.000000e+00 : f32
    %22 = vector.broadcast %cst_17 : f32 to vector<16x128xf32>
    %23 = arith.addf %22, %21 : vector<16x128xf32>
    %24 = arith.divf %22, %23 : vector<16x128xf32>
    %c0_18 = arith.constant 0 : index
    %c0_19 = arith.constant 0 : index
    %25 = vector.load %arg8[%c0_18, %c0_19] : memref<16x256xf32, #tpu.memory_space<vmem>>, vector<16x128xf32>
    tpu.vector_store %arg8[%c0_18, %c0_19], %24 {strides = array<i32>} : memref<16x256xf32, #tpu.memory_space<vmem>>, vector<16x128xf32>,
    %c0_20 = arith.constant 0 : index
    %c128 = arith.constant 128 : index
    %26 = vector.load %arg6[%c0_20, %c128] : memref<128x256xf32, #tpu.memory_space<vmem>>, vector<128x128xf32>
    %cst_21 = arith.constant dense<0.000000e+00> : vector<16x128xf32>
    %27 = tpu.matmul %14, %26, %cst_21 {dimension_numbers = #tpu.dot_dimension_numbers<[1], [0], [0], [1], [0, 0, 1, 1], [], []>} : vector<16x128xf32>, vector<128x128xf32>, vector<16x128xf32> -> vector<16x128xf32>
    %c0_22 = arith.constant 0 : index
    %c128_23 = arith.constant 128 : index
    %28 = vector.load %arg7[%c0_22, %c128_23] : memref<1x256xf32, #tpu.memory_space<vmem>>, vector<1x128xf32>
    %29 = vector.broadcast %28 : vector<1x128xf32> to vector<16x128xf32>
    %30 = arith.addf %27, %29 : vector<16x128xf32>
    %31 = arith.negf %30 : vector<16x128xf32>
    %32 = math.exp %31 : vector<16x128xf32>
    %cst_24 = arith.constant 1.000000e+00 : f32
    %33 = vector.broadcast %cst_24 : f32 to vector<16x128xf32>
    %34 = arith.addf %33, %32 : vector<16x128xf32>
    %35 = arith.divf %33, %34 : vector<16x128xf32>
    %c0_25 = arith.constant 0 : index
    %c128_26 = arith.constant 128 : index
    %36 = vector.load %arg8[%c0_25, %c128_26] : memref<16x256xf32, #tpu.memory_space<vmem>>, vector<16x128xf32>
    tpu.vector_store %arg8[%c0_25, %c128_26], %35 {strides = array<i32>} : memref<16x256xf32, #tpu.memory_space<vmem>>, vector<16x128xf32>,
    return
  }
  func.func @transform_0(%arg0: i32) -> (i32, i32) {
    %c0_i32 = arith.constant 0 : i32
    %c0_i32_0 = arith.constant 0 : i32
    return %arg0, %c0_i32 : i32, i32
  }
  func.func @transform_1(%arg0: i32) -> (i32, i32) {
    %c0_i32 = arith.constant 0 : i32
    %c0_i32_0 = arith.constant 0 : i32
    %c0_i32_1 = arith.constant 0 : i32
    return %c0_i32, %c0_i32_0 : i32, i32
  }
  func.func @transform_2(%arg0: i32) -> (i32, i32) {
    %c0_i32 = arith.constant 0 : i32
    %c0_i32_0 = arith.constant 0 : i32
    %c0_i32_1 = arith.constant 0 : i32
    return %c0_i32, %c0_i32_0 : i32, i32
  }
  func.func @transform_3(%arg0: i32) -> (i32, i32) {
    %c0_i32 = arith.constant 0 : i32
    %c0_i32_0 = arith.constant 0 : i32
    %c0_i32_1 = arith.constant 0 : i32
    return %c0_i32, %c0_i32_0 : i32, i32
  }
  func.func @transform_4(%arg0: i32) -> (i32, i32) {
    %c0_i32 = arith.constant 0 : i32
    %c0_i32_0 = arith.constant 0 : i32
    %c0_i32_1 = arith.constant 0 : i32
    return %c0_i32, %c0_i32_0 : i32, i32
  }
  func.func @transform_5(%arg0: i32) -> (i32, i32) {
    %c0_i32 = arith.constant 0 : i32
    %c0_i32_0 = arith.constant 0 : i32
    %c0_i32_1 = arith.constant 0 : i32
    return %c0_i32, %c0_i32_0 : i32, i32
  }
  func.func @transform_6(%arg0: i32) -> (i32, i32) {
    %c0_i32 = arith.constant 0 : i32
    %c0_i32_0 = arith.constant 0 : i32
    %c0_i32_1 = arith.constant 0 : i32
    return %c0_i32, %c0_i32_0 : i32, i32
  }
  func.func @transform_7(%arg0: i32) -> (i32, i32) {
    %c0_i32 = arith.constant 0 : i32
    %c0_i32_0 = arith.constant 0 : i32
    return %arg0, %c0_i32 : i32, i32
  }
}

module attributes {stable_mosaic.version = 11 : i64} {
  func.func @_fused_mlp_kernel(%arg0: i32, %arg1: memref<16x16xf32, #tpu.memory_space<vmem>>, %arg2: memref<16x128xf32, #tpu.memory_space<vmem>>, %arg3: memref<1x128xf32, #tpu.memory_space<vmem>>, %arg4: memref<128x128xf32, #tpu.memory_space<vmem>>, %arg5: memref<1x128xf32, #tpu.memory_space<vmem>>, %arg6: memref<128x256xf32, #tpu.memory_space<vmem>>, %arg7: memref<1x256xf32, #tpu.memory_space<vmem>>, %arg8: memref<16x256xf32, #tpu.memory_space<vmem>>) attributes {dimension_semantics = [#tpu.dimension_semantics<parallel>], iteration_bounds = array<i64: 4>, scalar_prefetch = 0 : i64, scratch_operands = 0 : i64, tpu.core_type = #tpu.core_type<tc>, window_params = [{transform_indices = @transform_0, window_bounds = array<i64: 16, 16>}, {pipeline_mode = #tpu.pipeline_mode<synchronous>, transform_indices = @transform_1, window_bounds = array<i64: 16, 128>}, {pipeline_mode = #tpu.pipeline_mode<synchronous>, transform_indices = @transform_2, window_bounds = array<i64: 1, 128>}, {pipeline_mode = #tpu.pipeline_mode<synchronous>, transform_indices = @transform_3, window_bounds = array<i64: 128, 128>}, {pipeline_mode = #tpu.pipeline_mode<synchronous>, transform_indices = @transform_4, window_bounds = array<i64: 1, 128>}, {pipeline_mode = #tpu.pipeline_mode<synchronous>, transform_indices = @transform_5, window_bounds = array<i64: 128, 256>}, {pipeline_mode = #tpu.pipeline_mode<synchronous>, transform_indices = @transform_6, window_bounds = array<i64: 1, 256>}, {transform_indices = @transform_7, window_bounds = array<i64: 16, 256>}]} {
    %c0 = arith.constant 0 : index
    %c0_0 = arith.constant 0 : index
    %0 = vector.load %arg1[%c0, %c0_0] : memref<16x16xf32, #tpu.memory_space<vmem>>, vector<16x16xf32>
    %c0_1 = arith.constant 0 : index
    %c0_2 = arith.constant 0 : index
    %1 = vector.load %arg2[%c0_1, %c0_2] : memref<16x128xf32, #tpu.memory_space<vmem>>, vector<16x128xf32>
    %c0_3 = arith.constant 0 : index
    %c0_4 = arith.constant 0 : index
    %2 = vector.load %arg3[%c0_3, %c0_4] : memref<1x128xf32, #tpu.memory_space<vmem>>, vector<1x128xf32>
    %cst = arith.constant dense<0.000000e+00> : vector<16x128xf32>
    %3 = tpu.matmul %0, %1, %cst {dimension_numbers = #tpu.dot_dimension_numbers<[1], [0], [0], [1], [0, 0, 1, 1], [], []>} : vector<16x16xf32>, vector<16x128xf32>, vector<16x128xf32> -> vector<16x128xf32>
    %4 = vector.broadcast %2 : vector<1x128xf32> to vector<16x128xf32>
    %5 = arith.addf %3, %4 : vector<16x128xf32>
    %cst_5 = arith.constant 0.000000e+00 : f32
    %6 = vector.broadcast %cst_5 : f32 to vector<16x128xf32>
    %7 = arith.maximumf %5, %6 : vector<16x128xf32>
    %c0_6 = arith.constant 0 : index
    %c0_7 = arith.constant 0 : index
    %8 = vector.load %arg4[%c0_6, %c0_7] : memref<128x128xf32, #tpu.memory_space<vmem>>, vector<128x128xf32>
    %c0_8 = arith.constant 0 : index
    %c0_9 = arith.constant 0 : index
    %9 = vector.load %arg5[%c0_8, %c0_9] : memref<1x128xf32, #tpu.memory_space<vmem>>, vector<1x128xf32>
    %cst_10 = arith.constant dense<0.000000e+00> : vector<16x128xf32>
    %10 = tpu.matmul %7, %8, %cst_10 {dimension_numbers = #tpu.dot_dimension_numbers<[1], [0], [0], [1], [0, 0, 1, 1], [], []>} : vector<16x128xf32>, vector<128x128xf32>, vector<16x128xf32> -> vector<16x128xf32>
    %11 = vector.broadcast %9 : vector<1x128xf32> to vector<16x128xf32>
    %12 = arith.addf %10, %11 : vector<16x128xf32>
    %cst_11 = arith.constant 0.000000e+00 : f32
    %13 = vector.broadcast %cst_11 : f32 to vector<16x128xf32>
    %14 = arith.maximumf %12, %13 : vector<16x128xf32>
    %c0_12 = arith.constant 0 : index
    %c0_13 = arith.constant 0 : index
    %15 = vector.load %arg6[%c0_12, %c0_13] : memref<128x256xf32, #tpu.memory_space<vmem>>, vector<128x128xf32>
    %cst_14 = arith.constant dense<0.000000e+00> : vector<16x128xf32>
    %16 = tpu.matmul %14, %15, %cst_14 {dimension_numbers = #tpu.dot_dimension_numbers<[1], [0], [0], [1], [0, 0, 1, 1], [], []>} : vector<16x128xf32>, vector<128x128xf32>, vector<16x128xf32> -> vector<16x128xf32>
    %c0_15 = arith.constant 0 : index
    %c0_16 = arith.constant 0 : index
    %17 = vector.load %arg7[%c0_15, %c0_16] : memref<1x256xf32, #tpu.memory_space<vmem>>, vector<1x128xf32>
    %18 = vector.broadcast %17 : vector<1x128xf32> to vector<16x128xf32>
    %19 = arith.addf %16, %18 : vector<16x128xf32>
    %20 = arith.negf %19 : vector<16x128xf32>
    %21 = math.exp %20 : vector<16x128xf32>
    %cst_17 = arith.constant 1.000000e+00 : f32
    %22 = vector.broadcast %cst_17 : f32 to vector<16x128xf32>
    %23 = arith.addf %22, %21 : vector<16x128xf32>
    %24 = arith.divf %22, %23 : vector<16x128xf32>
    %c0_18 = arith.constant 0 : index
    %c0_19 = arith.constant 0 : index
    %25 = vector.load %arg8[%c0_18, %c0_19] : memref<16x256xf32, #tpu.memory_space<vmem>>, vector<16x128xf32>
    tpu.vector_store %arg8[%c0_18, %c0_19], %24 {strides = array<i32>} : memref<16x256xf32, #tpu.memory_space<vmem>>, vector<16x128xf32>,
    %c0_20 = arith.constant 0 : index
    %c128 = arith.constant 128 : index
    %26 = vector.load %arg6[%c0_20, %c128] : memref<128x256xf32, #tpu.memory_space<vmem>>, vector<128x128xf32>
    %cst_21 = arith.constant dense<0.000000e+00> : vector<16x128xf32>
    %27 = tpu.matmul %14, %26, %cst_21 {dimension_numbers = #tpu.dot_dimension_numbers<[1], [0], [0], [1], [0, 0, 1, 1], [], []>} : vector<16x128xf32>, vector<128x128xf32>, vector<16x128xf32> -> vector<16x128xf32>
    %c0_22 = arith.constant 0 : index
    %c128_23 = arith.constant 128 : index
    %28 = vector.load %arg7[%c0_22, %c128_23] : memref<1x256xf32, #tpu.memory_space<vmem>>, vector<1x128xf32>
    %29 = vector.broadcast %28 : vector<1x128xf32> to vector<16x128xf32>
    %30 = arith.addf %27, %29 : vector<16x128xf32>
    %31 = arith.negf %30 : vector<16x128xf32>
    %32 = math.exp %31 : vector<16x128xf32>
    %cst_24 = arith.constant 1.000000e+00 : f32
    %33 = vector.broadcast %cst_24 : f32 to vector<16x128xf32>
    %34 = arith.addf %33, %32 : vector<16x128xf32>
    %35 = arith.divf %33, %34 : vector<16x128xf32>
    %c0_25 = arith.constant 0 : index
    %c128_26 = arith.constant 128 : index
    %36 = vector.load %arg8[%c0_25, %c128_26] : memref<16x256xf32, #tpu.memory_space<vmem>>, vector<16x128xf32>
    tpu.vector_store %arg8[%c0_25, %c128_26], %35 {strides = array<i32>} : memref<16x256xf32, #tpu.memory_space<vmem>>, vector<16x128xf32>,
    return
  }
  func.func @transform_0(%arg0: i32) -> (i32, i32) {
    %c0_i32 = arith.constant 0 : i32
    %c0_i32_0 = arith.constant 0 : i32
    return %arg0, %c0_i32 : i32, i32
  }
  func.func @transform_1(%arg0: i32) -> (i32, i32) {
    %c0_i32 = arith.constant 0 : i32
    %c0_i32_0 = arith.constant 0 : i32
    %c0_i32_1 = arith.constant 0 : i32
    return %c0_i32, %c0_i32_0 : i32, i32
  }
  func.func @transform_2(%arg0: i32) -> (i32, i32) {
    %c0_i32 = arith.constant 0 : i32
    %c0_i32_0 = arith.constant 0 : i32
    %c0_i32_1 = arith.constant 0 : i32
    return %c0_i32, %c0_i32_0 : i32, i32
  }
  func.func @transform_3(%arg0: i32) -> (i32, i32) {
    %c0_i32 = arith.constant 0 : i32
    %c0_i32_0 = arith.constant 0 : i32
    %c0_i32_1 = arith.constant 0 : i32
    return %c0_i32, %c0_i32_0 : i32, i32
  }
  func.func @transform_4(%arg0: i32) -> (i32, i32) {
    %c0_i32 = arith.constant 0 : i32
    %c0_i32_0 = arith.constant 0 : i32
    %c0_i32_1 = arith.constant 0 : i32
    return %c0_i32, %c0_i32_0 : i32, i32
  }
  func.func @transform_5(%arg0: i32) -> (i32, i32) {
    %c0_i32 = arith.constant 0 : i32
    %c0_i32_0 = arith.constant 0 : i32
    %c0_i32_1 = arith.constant 0 : i32
    return %c0_i32, %c0_i32_0 : i32, i32
  }
  func.func @transform_6(%arg0: i32) -> (i32, i32) {
    %c0_i32 = arith.constant 0 : i32
    %c0_i32_0 = arith.constant 0 : i32
    %c0_i32_1 = arith.constant 0 : i32
    return %c0_i32, %c0_i32_0 : i32, i32
  }
  func.func @transform_7(%arg0: i32) -> (i32, i32) {
    %c0_i32 = arith.constant 0 : i32
    %c0_i32_0 = arith.constant 0 : i32
    return %arg0, %c0_i32 : i32, i32
  }
}

</mosaic_0001>

<bundles_post_ra>
// kernel: tpu_custom_call.1
= control target key start
LH: loop header
LB: loop body
LE: loop exit
PB: predicated region body
PF: predicated region fallthrough
CT: control target
= control target key end

     0   :  { %12 = vsyncpa [#allocation3], 0  ;;  %s1580_s0 = inlined_call_operand.vmem [shape: f32[64,16], index: 0, kind: input, shape index: {}]   ;;  %s1581_s1 = inlined_call_operand.vmem [shape: f32[16,128], index: 1, kind: input, shape index: {}]   ;;  %s1582_s2 = inlined_call_operand.vmem [shape: f32[1,128], index: 2, kind: input, shape index: {}]   ;;  %s1583_s3 = inlined_call_operand.hbm [shape: f32[128,128], index: 3, kind: input, shape index: {}]   ;;  %s1584_s4 = inlined_call_operand.vmem [shape: f32[1,128], index: 4, kind: input, shape index: {}]   ;;  %s1585_s5 = inlined_call_operand.hbm [shape: f32[128,256], index: 5, kind: input, shape index: {}]   ;;  %s1586_s6 = inlined_call_operand.vmem [shape: f32[1,256], index: 6, kind: input, shape index: {}]   ;;  %s1587_s7 = inlined_call_operand.hbm [shape: f32[64,256], index: 7, kind: output, shape index: {}]  }
   0x1   :  { %13 = vsyncpa [#allocation6], 0 }
   0x2   :  { %14 = vsyncpa [#allocation4], 0 }
   0x3   :  { %16 = vsyncpa [#allocation4 + $0x1], 0  ;;  %s1386_s24 = smov 0   ;;  %s1388_s25 = smov 0  }
   0x4   :  { %s1390_s26 = smov 0   ;;  %s1392_s27 = smov 0  }
   0x5 LB: > { %s1407_s28 = sadd.s32 4294967295, %s1335_s27   ;;  %s828_s29 = sadd.s32 4294967294, %s1335_s27   ;;  %s1335_s27 = sphi %s1392_s27, %s1607_s27   ;;  %s1331_s26 = sphi %s1390_s26, %s1606_s26   ;;  %s1327_s25 = sphi %s1388_s25, %s1605_s25   ;;  %s1323_s24 = sphi %s1386_s24, %s1604_s24  }
   0x6   : > { %s1411_s30 = sadd.s32 1, %s1335_s27   ;;  %s181_s8 = sadd.s32 1, %s1331_s26 }
   0x7   : > { %s178_s9 = ssub.s32 %s1335_s27, %s1411_s30  ;;  %p191_p0 = scmp.ne.s32.totalorder %s1331_s26, %s1327_s25 }
   0x8   : > { %p179_p1 = scmp.eq.s32.totalorder %s178_s9, 0  ;;  %p192_p2 = scmp.eq.s32.totalorder %s1407_s28, 3 }
   0x9   : > { %p197_p3 = scmp.ne.s32.totalorder %s1327_s25, %s1323_s24  ;;  %p198_p4 = scmp.eq.s32.totalorder %s828_s29, 3 }
   0xa   : > { %s1422_s10 = scalar_select %p179_p1, %s1331_s26, %s181_s8  }
   0xb   : > { %p1424_p5 = por %p192_p2, %p191_p0  ;;  %p1428_p6 = por %p198_p4, %p197_p3 }
   0xc   : > { %1591 = sst [smem:[#allocation11_spill]] %s1422_s10  ;;  %p829_p7 = scmp.ge.s32.totalorder %s1335_s27, 1 }
   0xd   : > { %s1592_s11 = scalar_select %p1424_p5, 1, 0 }
   0xe   : > { %s1593_s12 = scalar_select %p1428_p6, 1, 0 }
   0xf   : > { %p205_p8 = scmp.lt.s32.totalorder %s1335_s27, 5  ;;  %p1588_p9 = scmp.eq.s32.totalorder %s1407_s28, 0 }
  0x10   : > { %s1337_s14 = smov [#allocation2]   ;;  %s1338_s17 = smov [#allocation5]  }
  0x11   : > { %p1435_p10 = pnand %p829_p7, %p205_p8  ;;  %s223_s15 = sshll.u32 %s1337_s14, 4  ;;  %s224_s15 = int_to_ptr.vmem [resolvable:$true] %s223_s15 }
  0x12   : > { %s239_s18 = sshll.u32 %s1338_s17, 4  ;;  %s1209_s21 = scalar_lea.hbm %s1583_s3, 2048  ;;  %s1447_s18 = int_to_ptr.vmem [resolvable:$true] %s239_s18 }
  0x13   : > { %s1594_s13 = scalar_select %p1435_p10, 1, 0 }
  0x14   : > { %p1137_p11 = pneg %p1435_p10  ;;  %p1210_p13 = scmp.ne.s32.totalorder %s1583_s3, %s1209_s21 }
  0x15   : > { %p1216_p3 = scmp.lt.u32.totalorder %s1209_s21, %s1583_s3 }
  0x16   : > { %p1443_p12 = pnand %p1588_p9, %p1137_p11 }
  0x18   : > { %p1211_p0 = pneg %p1443_p12 }
  0x1a   : > { %p1212_p1 = pnand %p1211_p0, %p1210_p13 }
  0x1c   : > { %p1213_p2 = pneg %p1212_p1 }
  0x1e   : > { %p1218_p4 = pnand %p1216_p3, %p1213_p2 }
  0x20   : > { %1221 = shalt.err (!%p1218_p4)
}
  0x21   : > { %s1222_s9 = scalar_lea.vmem %s224_s15, 2048  ;;  %p1230_p9 = scmp.lt.s32.totalorder %s224_s15, %s224_s15 }
  0x22   : > { %p1223_p7 = scmp.ne.s32.totalorder %s224_s15, %s1222_s9  ;;  %p1231_p6 = scmp.lt.s32.totalorder %s1222_s9, %s1222_s9 }
  0x24   : > { %p1225_p8 = pnand %p1223_p7, %p1211_p0  ;;  %p1232_p5 = por %p1231_p6, %p1230_p9 }
  0x26   : > { %p1226_p11 = pneg %p1225_p8 }
  0x28   : > { %p1233_p10 = pnand %p1232_p5, %p1226_p11 }
  0x2a   : > { %1236 = shalt.err (!%p1233_p10)
}
  0x2b   : > { %s1339_s14 = smov 128   ;;  %s1340_s17 = smov 8  }
  0x2c   : > { %1140 = dma.hbm_to_vmem [thread:$0]  (!%p1443_p12), %s1583_s3, 2048, %s224_s15, [#allocation3], %s1339_s14, %s1339_s14, %s1340_s17  }
  0x2d   : > { %s1237_s23 = scalar_lea.hbm %s1585_s5, 4096 }
  0x2e   : > { %p1238_p13 = scmp.ne.s32.totalorder %s1585_s5, %s1237_s23  ;;  %p1244_p9 = scmp.lt.u32.totalorder %s1237_s23, %s1585_s5 }
  0x30   : > { %p1240_p5 = pnand %p1238_p13, %p1211_p0 }
  0x32   : > { %p1241_p6 = pneg %p1240_p5 }
  0x34   : > { %p1246_p10 = pnand %p1244_p9, %p1241_p6 }
  0x36   : > { %1249 = shalt.err (!%p1246_p10)
}
  0x37   : > { %s1250_s15 = scalar_lea.vmem %s1447_s18, 4096  ;;  %p1258_p4 = scmp.lt.s32.totalorder %s1447_s18, %s1447_s18 }
  0x38   : > { %p1251_p1 = scmp.ne.s32.totalorder %s1447_s18, %s1250_s15  ;;  %p1259_p7 = scmp.lt.s32.totalorder %s1250_s15, %s1250_s15 }
  0x3a   : > { %p1253_p2 = pnand %p1251_p1, %p1211_p0  ;;  %p1260_p8 = por %p1259_p7, %p1258_p4 }
  0x3c   : > { %p1254_p3 = pneg %p1253_p2 }
  0x3e   : > { %p1261_p11 = pnand %p1260_p8, %p1254_p3 }
  0x40   : > { %1264 = shalt.err (!%p1261_p11)
}
  0x41   : > { %s1341_s10 = smov 256   ;;  %s1342_s14 = smov 16  }
  0x42   : > { %1143 = dma.hbm_to_vmem [thread:$0]  (!%p1443_p12), %s1585_s5, 4096, %s1447_s18, [#allocation6], %s1341_s10, %s1341_s10, %s1342_s14  }
  0x43   : > { %p1596_p13 = scmp.ne.s32.totalorder %s1594_s13, 0 }
  0x44   : > { %p1597_p0 = scmp.eq.s32.totalorder (!%p1596_p13), %s1407_s28, 0 }
  0x45   : > { %267 = sbr.rel (%p1596_p13) target bundleno = 782 (0x30e), region = 48 }
  0x4c   : > { %1310 = dma.done.wait (%p1597_p0), [#allocation3], 2048   ;;  %p1598_p5 = pmov %p1597_p0 }
  0x4d   : > { %p1599_p6 = pmov %p1597_p0 }
  0x4e   : > { %1312 = vsyncadd (%p1598_p5), [#allocation3], 4294965248 }
  0x4f   : > { %1314 = dma.done.wait (%p1599_p6), [#allocation6], 4096   ;;  %p1600_p9 = pmov %p1597_p0 }
  0x50   : > { %s837_s16 = sshll.u32 %s1407_s28, 1  ;;  %vm321_vm0 = vcmask 130048   ;;  %v312_v0 = vld [vmem:[%s1581_s1] sm:$0xff]  ;;  %v313_v1 = vld [vmem:[%s1581_s1 + $0x8] sm:$0xff]  ;;  %v407_v7 = vld [vmem:[#allocation2 + $0x10] sm:$0xff]  ;;  %s300_s13 = sand.u32 1, %s1327_s25  }
  0x51   : > { %1316 = vsyncadd (%p1600_p9), [#allocation6], 4294963200  ;;  %p304_p10 = scmp.lt.s32.totalorder %s837_s16, 7  ;;  %v1027_v3 = vpack.c.bf16 %v313_v1, %v312_v0  ;;  %v405_v4 = vld [vmem:[#allocation2] sm:$0xff]  ;;  %v406_v5 = vld [vmem:[#allocation2 + $0x8] sm:$0xff]  ;;  %s836_s20 = sshll.u32 %s300_s13, 5 }
  0x52   : > { %v1031_v6 = vpack.c.bf16 %v406_v5, %v405_v4  ;;  %v408_v8 = vld [vmem:[#allocation2 + $0x18] sm:$0xff]  ;;  %v409_v10 = vld [vmem:[#allocation2 + $0x20] sm:$0xff]  ;;  %v410_v11 = vld [vmem:[#allocation2 + $0x28] sm:$0xff]  ;;  %s302_s22 = scalar_lea.vmem [#allocation7], %s836_s20  ;;  %p1601_p1 = scmp.ne.s32.totalorder %s1592_s11, 0 }
  0x53   : > { %s1609_s16 = smov (!%p304_p10, %s837_s16), 7  ;;  %1028 = vmatprep.subr.bf16.mxu0 %v1027_v3  ;;  %v1035_v9 = vpack.c.bf16 %v408_v8, %v407_v7  ;;  %v1039_v13 = vpack.c.bf16 %v410_v11, %v409_v10  ;;  %v411_v14 = vld [vmem:[#allocation2 + $0x30] sm:$0xff]  ;;  %v412_v15 = vld [vmem:[#allocation2 + $0x38] sm:$0xff]  ;;  %v413_v17 = vld [vmem:[#allocation2 + $0x40] sm:$0xff]  ;;  %s744_s23 = sshll.u32 %s302_s22, 4  ;;  %s1537_s23 = int_to_ptr.vmem [resolvable:$true] %s744_s23 }
  0x54   : > { %s838_s18 = sshll.u32 %s1609_s16, 3  ;;  %1030 = vmatpush3.bf16.msra.mxu0 %v1027_v3  ;;  %1032 = vmatprep.subr.bf16.mxu1 %v1031_v6  ;;  %v1043_v16 = vpack.c.bf16 %v412_v15, %v411_v14  ;;  %v414_v18 = vld [vmem:[#allocation2 + $0x48] sm:$0xff]  ;;  %v415_v20 = vld [vmem:[#allocation2 + $0x50] sm:$0xff]  ;;  %v416_v21 = vld [vmem:[#allocation2 + $0x58] sm:$0xff]  ;;  %s1265_s15 = scalar_lea.vmem %s1537_s23, 512 }
  0x55   : > { %s307_s21 = scalar_lea.vmem %s1580_s0, %s838_s18  ;;  %1034 = vmatpush3.bf16.msra.mxu1 %v1031_v6  ;;  %v1047_v19 = vpack.c.bf16 %v414_v18, %v413_v17  ;;  %v1051_v22 = vpack.c.bf16 %v416_v21, %v415_v20  ;;  %v417_v23 = vld [vmem:[#allocation2 + $0x60] sm:$0xff]  ;;  %v418_v24 = vld [vmem:[#allocation2 + $0x68] sm:$0xff]  ;;  %v419_v26 = vld [vmem:[#allocation2 + $0x70] sm:$0xff]  ;;  %p1266_p12 = scmp.ne.s32.totalorder %s1537_s23, %s1265_s15 }
  0x56   : > { %v310_v2 = vld [vmem:[%s307_s21] sm:$0xff]  ;;  %v311_v12 = vld [vmem:[%s307_s21 + $0x8] sm:$0xff]  ;;  %1036 = vmatprep.subr.bf16.mxu1 %v1035_v9  ;;  %v1055_v25 = vpack.c.bf16 %v418_v24, %v417_v23  ;;  %v420_v27 = vld [vmem:[#allocation2 + $0x78] sm:$0xff]  ;;  %s856_s21 = sshll.u32 %s1407_s28, 9  ;;  %s1539_s28 = scalar_lea.sflag [#allocation4], %s300_s13 }
  0x57   : > { %919 = vmatprep.mubr.msk.f32.mxu0 %vm321_vm0, %v310_v2  ;;  %v1059_v28 = vpack.c.bf16 %v420_v27, %v419_v26  ;;  %v505_v29 = vld [vmem:[#allocation5] sm:$0xff]  ;;  %v506_v30 = vld [vmem:[#allocation5 + $0x10] sm:$0xff]  ;;  %v617_v31 = vld [vmem:[#allocation5 + $0x8] sm:$0xff]  ;;  %s1535_s9 = scalar_lea.hbm %s1587_s7, %s856_s21  ;;  %p1267_p2 = pnand %p1266_p12, %p1601_p1 }
  0x58   : > { %920 = vmatmul.mubr.msk.f32.vlgmr.msra.gmra.mrb[0].mxu0 %vm321_vm0, %v311_v12  ;;  %v1063_v32 = vpack.c.bf16 %v506_v30, %v505_v29  ;;  %v618_v33 = vld [vmem:[#allocation5 + $0x18] sm:$0xff]  ;;  %v507_v34 = vld [vmem:[#allocation5 + $0x20] sm:$0xff]  ;;  %v508_v35 = vld [vmem:[#allocation5 + $0x30] sm:$0xff]  ;;  %s1343_s10 = smov [#allocation7]  }
  0x59   : > { %1038 = vmatpush3.bf16.msra.mxu1 %v1035_v9  ;;  %v1095_v36 = vpack.c.bf16 %v618_v33, %v617_v31  ;;  %v1067_v37 = vpack.c.bf16 %v508_v35, %v507_v34  ;;  %v509_v38 = vld [vmem:[#allocation5 + $0x40] sm:$0xff]  ;;  %v510_v39 = vld [vmem:[#allocation5 + $0x50] sm:$0xff]  ;;  %v619_v58 = vld [vmem:[#allocation5 + $0x28] sm:$0xff]  ;;  %p1268_p3 = pneg %p1267_p2  ;;  %s1269_s14 = sshll.u32 %s1343_s10, 4  ;;  %s1270_s14 = int_to_ptr.vmem [resolvable:$false] %s1269_s14 }
  0x5a   : > { %1040 = vmatprep.subr.bf16.mxu1 %v1039_v13  ;;  %1064 = vmatprep.subr.bf16.mxu0 %v1063_v32  ;;  %v1071_v40 = vpack.c.bf16 %v510_v39, %v509_v38  ;;  %v511_v41 = vld [vmem:[#allocation5 + $0x60] sm:$0xff]  ;;  %v512_v42 = vld [vmem:[#allocation5 + $0x70] sm:$0xff]  ;;  %v620_v59 = vld [vmem:[#allocation5 + $0x38] sm:$0xff]  ;;  %s1271_s17 = scalar_lea.vmem %s1270_s14, 1024  ;;  %p1272_p4 = scmp.lt.s32.totalorder %s1537_s23, %s1270_s14 }
  0x5b   : > { %1066 = vmatpush3.bf16.msra.mxu0 %v1063_v32  ;;  %v1075_v43 = vpack.c.bf16 %v512_v42, %v511_v41  ;;  %v513_v44 = vld [vmem:[#allocation5 + $0x80] sm:$0xff]  ;;  %v514_v45 = vld [vmem:[#allocation5 + $0x90] sm:$0xff]  ;;  %v1099_v62 = vpack.c.bf16 %v620_v59, %v619_v58  ;;  %v621_v63 = vld [vmem:[#allocation5 + $0x48] sm:$0xff]  ;;  %p1273_p7 = scmp.lt.s32.totalorder %s1271_s17, %s1265_s15 }
  0x5c   : > { %1068 = vmatprep.subr.bf16.mxu0 %v1067_v37  ;;  %v1079_v46 = vpack.c.bf16 %v514_v45, %v513_v44  ;;  %v515_v47 = vld [vmem:[#allocation5 + $0xa0] sm:$0xff]  ;;  %v516_v48 = vld [vmem:[#allocation5 + $0xb0] sm:$0xff]  ;;  %v622_v0 = vld [vmem:[#allocation5 + $0x58] sm:$0xff] }
  0x5d   : > { %1042 = vmatpush3.bf16.msra.mxu1 %v1039_v13  ;;  %v1083_v49 = vpack.c.bf16 %v516_v48, %v515_v47  ;;  %v517_v50 = vld [vmem:[#allocation5 + $0xc0] sm:$0xff]  ;;  %v518_v51 = vld [vmem:[#allocation5 + $0xd0] sm:$0xff]  ;;  %v1103_v1 = vpack.c.bf16 %v622_v0, %v621_v63  ;;  %v623_v2 = vld [vmem:[#allocation5 + $0x68] sm:$0xff]  ;;  %p1274_p8 = por %p1273_p7, %p1272_p4 }
  0x5e   : > { %1044 = vmatprep.subr.bf16.mxu1 %v1043_v16  ;;  %v1087_v52 = vpack.c.bf16 %v518_v51, %v517_v50  ;;  %v839_v53 = vld [vmem:[%s1582_s2] ss:$0 sm:$0xff]  ;;  %v624_v3 = vld [vmem:[#allocation5 + $0x78] sm:$0xff]  ;;  %v625_v5 = vld [vmem:[#allocation5 + $0x88] sm:$0xff] }
  0x5f   : > { %1070 = vmatpush3.bf16.msra.mxu0 %v1067_v37  ;;  %v1107_v4 = vpack.c.bf16 %v624_v3, %v623_v2  ;;  %v626_v6 = vld [vmem:[#allocation5 + $0x98] sm:$0xff]  ;;  %v627_v8 = vld [vmem:[#allocation5 + $0xa8] sm:$0xff]  ;;  %v519_v14 = vld [vmem:[#allocation5 + $0xe0] sm:$0xff]  ;;  %p1275_p11 = pnand %p1274_p8, %p1268_p3 }
  0x60   : > { %1072 = vmatprep.subr.bf16.mxu0 %v1071_v40  ;;  %v1111_v7 = vpack.c.bf16 %v626_v6, %v625_v5  ;;  %v628_v9 = vld [vmem:[#allocation5 + $0xb8] sm:$0xff]  ;;  %v629_v11 = vld [vmem:[#allocation5 + $0xc8] sm:$0xff]  ;;  %v520_v15 = vld [vmem:[#allocation5 + $0xf0] sm:$0xff] }
  0x61   : > { %1046 = vmatpush3.bf16.msra.mxu1 %v1043_v16  ;;  %v1115_v10 = vpack.c.bf16 %v628_v9, %v627_v8  ;;  %v630_v12 = vld [vmem:[#allocation5 + $0xd8] sm:$0xff]  ;;  %v1091_v16 = vpack.c.bf16 %v520_v15, %v519_v14  ;;  %v631_v17 = vld [vmem:[#allocation5 + $0xe8] sm:$0xff]  ;;  %v842_v20 = vld [vmem:[%s1584_s4] ss:$0 sm:$0xff] }
  0x62   : > { %1048 = vmatprep.subr.bf16.mxu1 %v1047_v19  ;;  %v1119_v13 = vpack.c.bf16 %v630_v12, %v629_v11  ;;  %v632_v18 = vld [vmem:[#allocation5 + $0xf8] sm:$0xff]  ;;  %v843_v27 = vld [vmem:[%s1586_s6] ss:$0 sm:$0xff] }
  0x63   : > { %1074 = vmatpush3.bf16.msra.mxu0 %v1071_v40 }
  0x64   : > { %1076 = vmatprep.subr.bf16.mxu0 %v1075_v43 }
  0x65   : > { %1050 = vmatpush3.bf16.msra.mxu1 %v1047_v19  ;;  %v1123_v19 = vpack.c.bf16 %v632_v18, %v631_v17 }
  0x66   : > { %1052 = vmatprep.subr.bf16.mxu1 %v1051_v22 }
  0x67   : > { %1078 = vmatpush3.bf16.msra.mxu0 %v1075_v43 }
  0x68   : > { %1080 = vmatprep.subr.bf16.mxu0 %v1079_v46 }
  0x69   : > { %1054 = vmatpush3.bf16.msra.mxu1 %v1051_v22 }
  0x6a   : > { %1056 = vmatprep.subr.bf16.mxu1 %v1055_v25 }
  0x6b   : > { %1082 = vmatpush3.bf16.msra.mxu0 %v1079_v46 }
  0x6c   : > { %1084 = vmatprep.subr.bf16.mxu0 %v1083_v49 }
  0x6d   : > { %1058 = vmatpush3.bf16.msra.mxu1 %v1055_v25 }
  0x6e   : > { %1060 = vmatprep.subr.bf16.mxu1 %v1059_v28 }
  0x6f   : > { %1086 = vmatpush3.bf16.msra.mxu0 %v1083_v49 }
  0x70   : > { %1088 = vmatprep.subr.bf16.mxu0 %v1087_v52 }
  0x71   : > { %1062 = vmatpush3.bf16.msra.mxu1 %v1059_v28  ;;  %v846_v28 = vld [vmem:[%s1586_s6 + $0x1] ss:$0 sm:$0xff] }
  0x72   : > { %1096 = vmatprep.subr.bf16.mxu1 %v1095_v36 }
  0x73   : > { %1090 = vmatpush3.bf16.msra.mxu0 %v1087_v52 }
  0x74   : > { %1092 = vmatprep.subr.bf16.mxu0 %v1091_v16 }
  0x77   : > { %1094 = vmatpush3.bf16.msra.mxu0 %v1091_v16 }
 0x12b   : > { %v921_v54 = vpop.f32.mrb[0].mxu0 }
 0x12c   : > { %v400_v55 = vadd.f32 %v921_v54, %v839_v53  ;;  %v394_v56 = vpop.f32.mrb[1].mxu0 }
 0x12d   : > { %v395_v57 = vadd.f32 %v839_v53, %v394_v56 }
 0x12e   : > { %v404_v61 = vmax.f32 %v400_v55, 0.0 }
 0x12f   : > { %v403_v60 = vmax.f32 %v395_v57, 0.0 }
 0x131   : > { %954 = vmatprep.mubr.f32.mxu1 %v403_v60 }
 0x132   : > { %955 = vmatmul.mubr.f32.vlgmr.msra.gmra.mrb[0].mxu1 %v404_v61 }
 0x133   : > { %1098 = vmatpush3.bf16.msra.mxu1 %v1095_v36 }
 0x134   : > { %1100 = vmatprep.subr.bf16.mxu1 %v1099_v62 }
 0x137   : > { %1102 = vmatpush3.bf16.msra.mxu1 %v1099_v62 }
 0x138   : > { %1104 = vmatprep.subr.bf16.mxu1 %v1103_v1 }
 0x13b   : > { %1106 = vmatpush3.bf16.msra.mxu1 %v1103_v1 }
 0x13c   : > { %1108 = vmatprep.subr.bf16.mxu1 %v1107_v4 }
 0x13f   : > { %1110 = vmatpush3.bf16.msra.mxu1 %v1107_v4 }
 0x140   : > { %1112 = vmatprep.subr.bf16.mxu1 %v1111_v7 }
 0x143   : > { %1114 = vmatpush3.bf16.msra.mxu1 %v1111_v7 }
 0x144   : > { %1116 = vmatprep.subr.bf16.mxu1 %v1115_v10 }
 0x147   : > { %1118 = vmatpush3.bf16.msra.mxu1 %v1115_v10 }
 0x148   : > { %1120 = vmatprep.subr.bf16.mxu1 %v1119_v13 }
 0x14b   : > { %1122 = vmatpush3.bf16.msra.mxu1 %v1119_v13 }
 0x14c   : > { %1124 = vmatprep.subr.bf16.mxu1 %v1123_v19 }
 0x14f   : > { %1126 = vmatpush3.bf16.msra.mxu1 %v1123_v19 }
 0x205   : > { %v956_v21 = vpop.f32.mrb[0].mxu1 }
 0x206   : > { %v500_v22 = vadd.f32 %v956_v21, %v842_v20  ;;  %v494_v23 = vpop.f32.mrb[1].mxu1 }
 0x207   : > { %v495_v24 = vadd.f32 %v842_v20, %v494_v23 }
 0x208   : > { %v504_v26 = vmax.f32 %v500_v22, 0.0 }
 0x209   : > { %v503_v25 = vmax.f32 %v495_v24, 0.0 }
 0x20b   : > { %989 = vmatprep.mubr.f32.mxu0 %v503_v25  ;;  %1024 = vmatprep.mubr.f32.mxu1 %v503_v25 }
 0x20c   : > { %990 = vmatmul.mubr.f32.vlgmr.msra.gmra.mrb[2].mxu0 %v504_v26  ;;  %1025 = vmatmul.mubr.f32.vlgmr.msra.gmra.mrb[2].mxu1 %v504_v26 }
 0x2df   : > { %v991_v29 = vpop.f32.mrb[2].mxu0  ;;  %v1026_v30 = vpop.f32.mrb[2].mxu1 }
 0x2e0   : > { %v600_v31 = vadd.f32 %v991_v29, %v843_v27  ;;  %v712_v32 = vadd.f32 %v1026_v30, %v846_v28  ;;  %v594_v33 = vpop.f32.mrb[3].mxu0  ;;  %v706_v34 = vpop.f32.mrb[3].mxu1 }
 0x2e1   : > { %v595_v35 = vadd.f32 %v843_v27, %v594_v33  ;;  %v707_v36 = vadd.f32 %v846_v28, %v706_v34 }
 0x2e2   : > { %v845_v37 = vmul.f32 -1.442695, %v600_v31  ;;  %v848_v38 = vmul.f32 -1.442695, %v712_v32 }
 0x2e3   : > { %v844_v39 = vmul.f32 -1.442695, %v595_v35  ;;  %v847_v40 = vmul.f32 -1.442695, %v707_v36 }
 0x2e4   : > { %1193 = vpow2.f32 %v845_v37 }
 0x2e5   : > { %1195 = vpow2.f32 %v848_v38 }
 0x2e6   : > { %1197 = vpow2.f32 %v844_v39 }
 0x2e7   : > { %1199 = vpow2.f32 %v847_v40 }
 0x2ee   : > { %v1194_v41 = vpop.eup %1193 }
 0x2ef   : > { %v1196_v42 = vpop.eup %1195  ;;  %v610_v43 = vadd.f32 1.0, %v1194_v41 }
 0x2f0   : > { %v1198_v44 = vpop.eup %1197  ;;  %v722_v45 = vadd.f32 1.0, %v1196_v42 }
 0x2f1   : > { %v1200_v46 = vpop.eup %1199  ;;  %1201 = vrcp.f32 %v610_v43  ;;  %v609_v47 = vadd.f32 1.0, %v1198_v44 }
 0x2f2   : > { %1203 = vrcp.f32 %v722_v45  ;;  %v721_v48 = vadd.f32 1.0, %v1200_v46 }
 0x2f3   : > { %1205 = vrcp.f32 %v609_v47 }
 0x2f4   : > { %1207 = vrcp.f32 %v721_v48 }
 0x2fb   : > { %v1202_v49 = vpop.eup %1201 }
 0x2fc   : > { %v1204_v50 = vpop.eup %1203  ;;  %616 = vst [vmem:[%s302_s22 + $0x10] sm:$0xff] %v1202_v49 }
 0x2fd   : > { %v1206_v51 = vpop.eup %1205  ;;  %728 = vst [vmem:[%s302_s22 + $0x18] sm:$0xff] %v1204_v50 }
 0x2fe   : > { %v1208_v52 = vpop.eup %1207  ;;  %615 = vst [vmem:[%s302_s22] sm:$0xff] %v1206_v51 }
 0x2ff   : > { %727 = vst [vmem:[%s302_s22 + $0x8] sm:$0xff] %v1208_v52 }
 0x300   : > { %1278 = shalt.err (!%p1275_p11)
}
 0x301   : > { %s1279_s19 = scalar_lea.hbm %s1535_s9, 512  ;;  %s1283_s13 = scalar_lea.hbm %s1587_s7, 2048 }
 0x302   : > { %p1280_p13 = scmp.ne.s32.totalorder %s1535_s9, %s1279_s19  ;;  %p1284_p6 = scmp.lt.u32.totalorder %s1535_s9, %s1587_s7 }
 0x303   : > { %p1285_p9 = scmp.lt.u32.totalorder %s1283_s13, %s1279_s19  ;;  %p1287_p12 = scmp.lt.u32.totalorder %s1279_s19, %s1535_s9 }
 0x304   : > { %p1281_p0 = pnand %p1280_p13, %p1601_p1 }
 0x305   : > { %p1286_p10 = por %p1285_p9, %p1284_p6 }
 0x306   : > { %p1282_p5 = pneg %p1281_p0 }
 0x307   : > { %p1288_p2 = por %p1287_p12, %p1286_p10 }
 0x309   : > { %p1289_p3 = pnand %p1288_p2, %p1282_p5 }
 0x30b   : > { %1292 = shalt.err (!%p1289_p3)
}
 0x30c   : > { %s1344_s22 = smov 256   ;;  %s1345_s29 = smov 16  }
 0x30d   : > { %1135 = dma.vmem_to_hbm [thread:$0]  (%p1601_p1), %s1537_s23, 512, %s1535_s9, %s1539_s28, %s1344_s22, %s1344_s22, %s1345_s29  }
 0x30e PF: > { %p1152_p4 = scmp.ge.s32.totalorder %s1335_s27, 2  ;;  %s759_s8 = sand.u32 1, %s1323_s24  }
 0x30f   : > { %p1602_p7 = scmp.ne.s32.totalorder %s1593_s12, 0  ;;  %s760_s15 = scalar_lea.sflag [#allocation4], %s759_s8 }
 0x311   : > { %p1145_p8 = pnand %p1152_p4, %p1602_p7 }
 0x313   : > { %1318 = dma.done.wait (!%p1145_p8), %s760_s15, 512  }
 0x314   : > { %1320 = vsyncadd (!%p1145_p8), %s760_s15, 4294966784  ;;  %s1603_s10 = sld [smem:[#allocation11_spill]]  ;;  %p19_p11 = scmp.ge.s32.totalorder %s1411_s30, 6  }
 0x315   : > { %s1604_s24 = smov %s1327_s25  ;;  %s1605_s25 = smov %s1331_s26 }
 0x316   : > { %s1607_s27 = smov %s1411_s30  ;;  %21 = sbr.rel (!%p19_p11) target bundleno = 5 (0x5), region = 92 }
 0x31a   : > { %s1606_s26 = smov %s1603_s10 }
 0x31d   :  { %765 = vsyncpa [#allocation3], 1 }
 0x31e   :  { %767 = vsyncpa [#allocation3 + $0x1], 1 }
 0x31f   :  { %768 = vsyncpa [#allocation6], 1 }
 0x320   :  { %769 = vsyncpa [#allocation4], 1 }
 0x321   :  { %771 = vsyncpa [#allocation4 + $0x1], 1 }

// kernel: tpu_custom_call.1
= control target key start
LH: loop header
LB: loop body
LE: loop exit
PB: predicated region body
PF: predicated region fallthrough
CT: control target
= control target key end

     0   :  { %12 = vsyncpa [#allocation3], 0  ;;  %s1580_s0 = inlined_call_operand.vmem [shape: f32[64,16], index: 0, kind: input, shape index: {}]   ;;  %s1581_s1 = inlined_call_operand.vmem [shape: f32[16,128], index: 1, kind: input, shape index: {}]   ;;  %s1582_s2 = inlined_call_operand.vmem [shape: f32[1,128], index: 2, kind: input, shape index: {}]   ;;  %s1583_s3 = inlined_call_operand.hbm [shape: f32[128,128], index: 3, kind: input, shape index: {}]   ;;  %s1584_s4 = inlined_call_operand.vmem [shape: f32[1,128], index: 4, kind: input, shape index: {}]   ;;  %s1585_s5 = inlined_call_operand.hbm [shape: f32[128,256], index: 5, kind: input, shape index: {}]   ;;  %s1586_s6 = inlined_call_operand.vmem [shape: f32[1,256], index: 6, kind: input, shape index: {}]   ;;  %s1587_s7 = inlined_call_operand.hbm [shape: f32[64,256], index: 7, kind: output, shape index: {}]  }
   0x1   :  { %13 = vsyncpa [#allocation6], 0 }
   0x2   :  { %14 = vsyncpa [#allocation4], 0 }
   0x3   :  { %16 = vsyncpa [#allocation4 + $0x1], 0  ;;  %s1386_s24 = smov 0   ;;  %s1388_s25 = smov 0  }
   0x4   :  { %s1390_s26 = smov 0   ;;  %s1392_s27 = smov 0  }
   0x5 LB: > { %s1407_s28 = sadd.s32 4294967295, %s1335_s27   ;;  %s828_s29 = sadd.s32 4294967294, %s1335_s27   ;;  %s1335_s27 = sphi %s1392_s27, %s1607_s27   ;;  %s1331_s26 = sphi %s1390_s26, %s1606_s26   ;;  %s1327_s25 = sphi %s1388_s25, %s1605_s25   ;;  %s1323_s24 = sphi %s1386_s24, %s1604_s24  }
   0x6   : > { %s1411_s30 = sadd.s32 1, %s1335_s27   ;;  %s181_s8 = sadd.s32 1, %s1331_s26 }
   0x7   : > { %s178_s9 = ssub.s32 %s1335_s27, %s1411_s30  ;;  %p191_p0 = scmp.ne.s32.totalorder %s1331_s26, %s1327_s25 }
   0x8   : > { %p179_p1 = scmp.eq.s32.totalorder %s178_s9, 0  ;;  %p192_p2 = scmp.eq.s32.totalorder %s1407_s28, 3 }
   0x9   : > { %p197_p3 = scmp.ne.s32.totalorder %s1327_s25, %s1323_s24  ;;  %p198_p4 = scmp.eq.s32.totalorder %s828_s29, 3 }
   0xa   : > { %s1422_s10 = scalar_select %p179_p1, %s1331_s26, %s181_s8  }
   0xb   : > { %p1424_p5 = por %p192_p2, %p191_p0  ;;  %p1428_p6 = por %p198_p4, %p197_p3 }
   0xc   : > { %1591 = sst [smem:[#allocation11_spill]] %s1422_s10  ;;  %p829_p7 = scmp.ge.s32.totalorder %s1335_s27, 1 }
   0xd   : > { %s1592_s11 = scalar_select %p1424_p5, 1, 0 }
   0xe   : > { %s1593_s12 = scalar_select %p1428_p6, 1, 0 }
   0xf   : > { %p205_p8 = scmp.lt.s32.totalorder %s1335_s27, 5  ;;  %p1588_p9 = scmp.eq.s32.totalorder %s1407_s28, 0 }
  0x10   : > { %s1337_s14 = smov [#allocation2]   ;;  %s1338_s17 = smov [#allocation5]  }
  0x11   : > { %p1435_p10 = pnand %p829_p7, %p205_p8  ;;  %s223_s15 = sshll.u32 %s1337_s14, 4  ;;  %s224_s15 = int_to_ptr.vmem [resolvable:$true] %s223_s15 }
  0x12   : > { %s239_s18 = sshll.u32 %s1338_s17, 4  ;;  %s1209_s21 = scalar_lea.hbm %s1583_s3, 2048  ;;  %s1447_s18 = int_to_ptr.vmem [resolvable:$true] %s239_s18 }
  0x13   : > { %s1594_s13 = scalar_select %p1435_p10, 1, 0 }
  0x14   : > { %p1137_p11 = pneg %p1435_p10  ;;  %p1210_p13 = scmp.ne.s32.totalorder %s1583_s3, %s1209_s21 }
  0x15   : > { %p1216_p3 = scmp.lt.u32.totalorder %s1209_s21, %s1583_s3 }
  0x16   : > { %p1443_p12 = pnand %p1588_p9, %p1137_p11 }
  0x18   : > { %p1211_p0 = pneg %p1443_p12 }
  0x1a   : > { %p1212_p1 = pnand %p1211_p0, %p1210_p13 }
  0x1c   : > { %p1213_p2 = pneg %p1212_p1 }
  0x1e   : > { %p1218_p4 = pnand %p1216_p3, %p1213_p2 }
  0x20   : > { %1221 = shalt.err (!%p1218_p4)
}
  0x21   : > { %s1222_s9 = scalar_lea.vmem %s224_s15, 2048  ;;  %p1230_p9 = scmp.lt.s32.totalorder %s224_s15, %s224_s15 }
  0x22   : > { %p1223_p7 = scmp.ne.s32.totalorder %s224_s15, %s1222_s9  ;;  %p1231_p6 = scmp.lt.s32.totalorder %s1222_s9, %s1222_s9 }
  0x24   : > { %p1225_p8 = pnand %p1223_p7, %p1211_p0  ;;  %p1232_p5 = por %p1231_p6, %p1230_p9 }
  0x26   : > { %p1226_p11 = pneg %p1225_p8 }
  0x28   : > { %p1233_p10 = pnand %p1232_p5, %p1226_p11 }
  0x2a   : > { %1236 = shalt.err (!%p1233_p10)
}
  0x2b   : > { %s1339_s14 = smov 128   ;;  %s1340_s17 = smov 8  }
  0x2c   : > { %1140 = dma.hbm_to_vmem [thread:$0]  (!%p1443_p12), %s1583_s3, 2048, %s224_s15, [#allocation3], %s1339_s14, %s1339_s14, %s1340_s17  }
  0x2d   : > { %s1237_s23 = scalar_lea.hbm %s1585_s5, 4096 }
  0x2e   : > { %p1238_p13 = scmp.ne.s32.totalorder %s1585_s5, %s1237_s23  ;;  %p1244_p9 = scmp.lt.u32.totalorder %s1237_s23, %s1585_s5 }
  0x30   : > { %p1240_p5 = pnand %p1238_p13, %p1211_p0 }
  0x32   : > { %p1241_p6 = pneg %p1240_p5 }
  0x34   : > { %p1246_p10 = pnand %p1244_p9, %p1241_p6 }
  0x36   : > { %1249 = shalt.err (!%p1246_p10)
}
  0x37   : > { %s1250_s15 = scalar_lea.vmem %s1447_s18, 4096  ;;  %p1258_p4 = scmp.lt.s32.totalorder %s1447_s18, %s1447_s18 }
  0x38   : > { %p1251_p1 = scmp.ne.s32.totalorder %s1447_s18, %s1250_s15  ;;  %p1259_p7 = scmp.lt.s32.totalorder %s1250_s15, %s1250_s15 }
  0x3a   : > { %p1253_p2 = pnand %p1251_p1, %p1211_p0  ;;  %p1260_p8 = por %p1259_p7, %p1258_p4 }
  0x3c   : > { %p1254_p3 = pneg %p1253_p2 }
  0x3e   : > { %p1261_p11 = pnand %p1260_p8, %p1254_p3 }
  0x40   : > { %1264 = shalt.err (!%p1261_p11)
}
  0x41   : > { %s1341_s10 = smov 256   ;;  %s1342_s14 = smov 16  }
  0x42   : > { %1143 = dma.hbm_to_vmem [thread:$0]  (!%p1443_p12), %s1585_s5, 4096, %s1447_s18, [#allocation6], %s1341_s10, %s1341_s10, %s1342_s14  }
  0x43   : > { %p1596_p13 = scmp.ne.s32.totalorder %s1594_s13, 0 }
  0x44   : > { %p1597_p0 = scmp.eq.s32.totalorder (!%p1596_p13), %s1407_s28, 0 }
  0x45   : > { %267 = sbr.rel (%p1596_p13) target bundleno = 782 (0x30e), region = 48 }
  0x4c   : > { %1310 = dma.done.wait (%p1597_p0), [#allocation3], 2048   ;;  %p1598_p5 = pmov %p1597_p0 }
  0x4d   : > { %p1599_p6 = pmov %p1597_p0 }
  0x4e   : > { %1312 = vsyncadd (%p1598_p5), [#allocation3], 4294965248 }
  0x4f   : > { %1314 = dma.done.wait (%p1599_p6), [#allocation6], 4096   ;;  %p1600_p9 = pmov %p1597_p0 }
  0x50   : > { %s837_s16 = sshll.u32 %s1407_s28, 1  ;;  %vm321_vm0 = vcmask 130048   ;;  %v312_v0 = vld [vmem:[%s1581_s1] sm:$0xff]  ;;  %v313_v1 = vld [vmem:[%s1581_s1 + $0x8] sm:$0xff]  ;;  %v407_v7 = vld [vmem:[#allocation2 + $0x10] sm:$0xff]  ;;  %s300_s13 = sand.u32 1, %s1327_s25  }
  0x51   : > { %1316 = vsyncadd (%p1600_p9), [#allocation6], 4294963200  ;;  %p304_p10 = scmp.lt.s32.totalorder %s837_s16, 7  ;;  %v1027_v3 = vpack.c.bf16 %v313_v1, %v312_v0  ;;  %v405_v4 = vld [vmem:[#allocation2] sm:$0xff]  ;;  %v406_v5 = vld [vmem:[#allocation2 + $0x8] sm:$0xff]  ;;  %s836_s20 = sshll.u32 %s300_s13, 5 }
  0x52   : > { %v1031_v6 = vpack.c.bf16 %v406_v5, %v405_v4  ;;  %v408_v8 = vld [vmem:[#allocation2 + $0x18] sm:$0xff]  ;;  %v409_v10 = vld [vmem:[#allocation2 + $0x20] sm:$0xff]  ;;  %v410_v11 = vld [vmem:[#allocation2 + $0x28] sm:$0xff]  ;;  %s302_s22 = scalar_lea.vmem [#allocation7], %s836_s20  ;;  %p1601_p1 = scmp.ne.s32.totalorder %s1592_s11, 0 }
  0x53   : > { %s1609_s16 = smov (!%p304_p10, %s837_s16), 7  ;;  %1028 = vmatprep.subr.bf16.mxu0 %v1027_v3  ;;  %v1035_v9 = vpack.c.bf16 %v408_v8, %v407_v7  ;;  %v1039_v13 = vpack.c.bf16 %v410_v11, %v409_v10  ;;  %v411_v14 = vld [vmem:[#allocation2 + $0x30] sm:$0xff]  ;;  %v412_v15 = vld [vmem:[#allocation2 + $0x38] sm:$0xff]  ;;  %v413_v17 = vld [vmem:[#allocation2 + $0x40] sm:$0xff]  ;;  %s744_s23 = sshll.u32 %s302_s22, 4  ;;  %s1537_s23 = int_to_ptr.vmem [resolvable:$true] %s744_s23 }
  0x54   : > { %s838_s18 = sshll.u32 %s1609_s16, 3  ;;  %1030 = vmatpush3.bf16.msra.mxu0 %v1027_v3  ;;  %1032 = vmatprep.subr.bf16.mxu1 %v1031_v6  ;;  %v1043_v16 = vpack.c.bf16 %v412_v15, %v411_v14  ;;  %v414_v18 = vld [vmem:[#allocation2 + $0x48] sm:$0xff]  ;;  %v415_v20 = vld [vmem:[#allocation2 + $0x50] sm:$0xff]  ;;  %v416_v21 = vld [vmem:[#allocation2 + $0x58] sm:$0xff]  ;;  %s1265_s15 = scalar_lea.vmem %s1537_s23, 512 }
  0x55   : > { %s307_s21 = scalar_lea.vmem %s1580_s0, %s838_s18  ;;  %1034 = vmatpush3.bf16.msra.mxu1 %v1031_v6  ;;  %v1047_v19 = vpack.c.bf16 %v414_v18, %v413_v17  ;;  %v1051_v22 = vpack.c.bf16 %v416_v21, %v415_v20  ;;  %v417_v23 = vld [vmem:[#allocation2 + $0x60] sm:$0xff]  ;;  %v418_v24 = vld [vmem:[#allocation2 + $0x68] sm:$0xff]  ;;  %v419_v26 = vld [vmem:[#allocation2 + $0x70] sm:$0xff]  ;;  %p1266_p12 = scmp.ne.s32.totalorder %s1537_s23, %s1265_s15 }
  0x56   : > { %v310_v2 = vld [vmem:[%s307_s21] sm:$0xff]  ;;  %v311_v12 = vld [vmem:[%s307_s21 + $0x8] sm:$0xff]  ;;  %1036 = vmatprep.subr.bf16.mxu1 %v1035_v9  ;;  %v1055_v25 = vpack.c.bf16 %v418_v24, %v417_v23  ;;  %v420_v27 = vld [vmem:[#allocation2 + $0x78] sm:$0xff]  ;;  %s856_s21 = sshll.u32 %s1407_s28, 9  ;;  %s1539_s28 = scalar_lea.sflag [#allocation4], %s300_s13 }
  0x57   : > { %919 = vmatprep.mubr.msk.f32.mxu0 %vm321_vm0, %v310_v2  ;;  %v1059_v28 = vpack.c.bf16 %v420_v27, %v419_v26  ;;  %v505_v29 = vld [vmem:[#allocation5] sm:$0xff]  ;;  %v506_v30 = vld [vmem:[#allocation5 + $0x10] sm:$0xff]  ;;  %v617_v31 = vld [vmem:[#allocation5 + $0x8] sm:$0xff]  ;;  %s1535_s9 = scalar_lea.hbm %s1587_s7, %s856_s21  ;;  %p1267_p2 = pnand %p1266_p12, %p1601_p1 }
  0x58   : > { %920 = vmatmul.mubr.msk.f32.vlgmr.msra.gmra.mrb[0].mxu0 %vm321_vm0, %v311_v12  ;;  %v1063_v32 = vpack.c.bf16 %v506_v30, %v505_v29  ;;  %v618_v33 = vld [vmem:[#allocation5 + $0x18] sm:$0xff]  ;;  %v507_v34 = vld [vmem:[#allocation5 + $0x20] sm:$0xff]  ;;  %v508_v35 = vld [vmem:[#allocation5 + $0x30] sm:$0xff]  ;;  %s1343_s10 = smov [#allocation7]  }
  0x59   : > { %1038 = vmatpush3.bf16.msra.mxu1 %v1035_v9  ;;  %v1095_v36 = vpack.c.bf16 %v618_v33, %v617_v31  ;;  %v1067_v37 = vpack.c.bf16 %v508_v35, %v507_v34  ;;  %v509_v38 = vld [vmem:[#allocation5 + $0x40] sm:$0xff]  ;;  %v510_v39 = vld [vmem:[#allocation5 + $0x50] sm:$0xff]  ;;  %v619_v58 = vld [vmem:[#allocation5 + $0x28] sm:$0xff]  ;;  %p1268_p3 = pneg %p1267_p2  ;;  %s1269_s14 = sshll.u32 %s1343_s10, 4  ;;  %s1270_s14 = int_to_ptr.vmem [resolvable:$false] %s1269_s14 }
  0x5a   : > { %1040 = vmatprep.subr.bf16.mxu1 %v1039_v13  ;;  %1064 = vmatprep.subr.bf16.mxu0 %v1063_v32  ;;  %v1071_v40 = vpack.c.bf16 %v510_v39, %v509_v38  ;;  %v511_v41 = vld [vmem:[#allocation5 + $0x60] sm:$0xff]  ;;  %v512_v42 = vld [vmem:[#allocation5 + $0x70] sm:$0xff]  ;;  %v620_v59 = vld [vmem:[#allocation5 + $0x38] sm:$0xff]  ;;  %s1271_s17 = scalar_lea.vmem %s1270_s14, 1024  ;;  %p1272_p4 = scmp.lt.s32.totalorder %s1537_s23, %s1270_s14 }
  0x5b   : > { %1066 = vmatpush3.bf16.msra.mxu0 %v1063_v32  ;;  %v1075_v43 = vpack.c.bf16 %v512_v42, %v511_v41  ;;  %v513_v44 = vld [vmem:[#allocation5 + $0x80] sm:$0xff]  ;;  %v514_v45 = vld [vmem:[#allocation5 + $0x90] sm:$0xff]  ;;  %v1099_v62 = vpack.c.bf16 %v620_v59, %v619_v58  ;;  %v621_v63 = vld [vmem:[#allocation5 + $0x48] sm:$0xff]  ;;  %p1273_p7 = scmp.lt.s32.totalorder %s1271_s17, %s1265_s15 }
  0x5c   : > { %1068 = vmatprep.subr.bf16.mxu0 %v1067_v37  ;;  %v1079_v46 = vpack.c.bf16 %v514_v45, %v513_v44  ;;  %v515_v47 = vld [vmem:[#allocation5 + $0xa0] sm:$0xff]  ;;  %v516_v48 = vld [vmem:[#allocation5 + $0xb0] sm:$0xff]  ;;  %v622_v0 = vld [vmem:[#allocation5 + $0x58] sm:$0xff] }
  0x5d   : > { %1042 = vmatpush3.bf16.msra.mxu1 %v1039_v13  ;;  %v1083_v49 = vpack.c.bf16 %v516_v48, %v515_v47  ;;  %v517_v50 = vld [vmem:[#allocation5 + $0xc0] sm:$0xff]  ;;  %v518_v51 = vld [vmem:[#allocation5 + $0xd0] sm:$0xff]  ;;  %v1103_v1 = vpack.c.bf16 %v622_v0, %v621_v63  ;;  %v623_v2 = vld [vmem:[#allocation5 + $0x68] sm:$0xff]  ;;  %p1274_p8 = por %p1273_p7, %p1272_p4 }
  0x5e   : > { %1044 = vmatprep.subr.bf16.mxu1 %v1043_v16  ;;  %v1087_v52 = vpack.c.bf16 %v518_v51, %v517_v50  ;;  %v839_v53 = vld [vmem:[%s1582_s2] ss:$0 sm:$0xff]  ;;  %v624_v3 = vld [vmem:[#allocation5 + $0x78] sm:$0xff]  ;;  %v625_v5 = vld [vmem:[#allocation5 + $0x88] sm:$0xff] }
  0x5f   : > { %1070 = vmatpush3.bf16.msra.mxu0 %v1067_v37  ;;  %v1107_v4 = vpack.c.bf16 %v624_v3, %v623_v2  ;;  %v626_v6 = vld [vmem:[#allocation5 + $0x98] sm:$0xff]  ;;  %v627_v8 = vld [vmem:[#allocation5 + $0xa8] sm:$0xff]  ;;  %v519_v14 = vld [vmem:[#allocation5 + $0xe0] sm:$0xff]  ;;  %p1275_p11 = pnand %p1274_p8, %p1268_p3 }
  0x60   : > { %1072 = vmatprep.subr.bf16.mxu0 %v1071_v40  ;;  %v1111_v7 = vpack.c.bf16 %v626_v6, %v625_v5  ;;  %v628_v9 = vld [vmem:[#allocation5 + $0xb8] sm:$0xff]  ;;  %v629_v11 = vld [vmem:[#allocation5 + $0xc8] sm:$0xff]  ;;  %v520_v15 = vld [vmem:[#allocation5 + $0xf0] sm:$0xff] }
  0x61   : > { %1046 = vmatpush3.bf16.msra.mxu1 %v1043_v16  ;;  %v1115_v10 = vpack.c.bf16 %v628_v9, %v627_v8  ;;  %v630_v12 = vld [vmem:[#allocation5 + $0xd8] sm:$0xff]  ;;  %v1091_v16 = vpack.c.bf16 %v520_v15, %v519_v14  ;;  %v631_v17 = vld [vmem:[#allocation5 + $0xe8] sm:$0xff]  ;;  %v842_v20 = vld [vmem:[%s1584_s4] ss:$0 sm:$0xff] }
  0x62   : > { %1048 = vmatprep.subr.bf16.mxu1 %v1047_v19  ;;  %v1119_v13 = vpack.c.bf16 %v630_v12, %v629_v11  ;;  %v632_v18 = vld [vmem:[#allocation5 + $0xf8] sm:$0xff]  ;;  %v843_v27 = vld [vmem:[%s1586_s6] ss:$0 sm:$0xff] }
  0x63   : > { %1074 = vmatpush3.bf16.msra.mxu0 %v1071_v40 }
  0x64   : > { %1076 = vmatprep.subr.bf16.mxu0 %v1075_v43 }
  0x65   : > { %1050 = vmatpush3.bf16.msra.mxu1 %v1047_v19  ;;  %v1123_v19 = vpack.c.bf16 %v632_v18, %v631_v17 }
  0x66   : > { %1052 = vmatprep.subr.bf16.mxu1 %v1051_v22 }
  0x67   : > { %1078 = vmatpush3.bf16.msra.mxu0 %v1075_v43 }
  0x68   : > { %1080 = vmatprep.subr.bf16.mxu0 %v1079_v46 }
  0x69   : > { %1054 = vmatpush3.bf16.msra.mxu1 %v1051_v22 }
  0x6a   : > { %1056 = vmatprep.subr.bf16.mxu1 %v1055_v25 }
  0x6b   : > { %1082 = vmatpush3.bf16.msra.mxu0 %v1079_v46 }
  0x6c   : > { %1084 = vmatprep.subr.bf16.mxu0 %v1083_v49 }
  0x6d   : > { %1058 = vmatpush3.bf16.msra.mxu1 %v1055_v25 }
  0x6e   : > { %1060 = vmatprep.subr.bf16.mxu1 %v1059_v28 }
  0x6f   : > { %1086 = vmatpush3.bf16.msra.mxu0 %v1083_v49 }
  0x70   : > { %1088 = vmatprep.subr.bf16.mxu0 %v1087_v52 }
  0x71   : > { %1062 = vmatpush3.bf16.msra.mxu1 %v1059_v28  ;;  %v846_v28 = vld [vmem:[%s1586_s6 + $0x1] ss:$0 sm:$0xff] }
  0x72   : > { %1096 = vmatprep.subr.bf16.mxu1 %v1095_v36 }
  0x73   : > { %1090 = vmatpush3.bf16.msra.mxu0 %v1087_v52 }
  0x74   : > { %1092 = vmatprep.subr.bf16.mxu0 %v1091_v16 }
  0x77   : > { %1094 = vmatpush3.bf16.msra.mxu0 %v1091_v16 }
 0x12b   : > { %v921_v54 = vpop.f32.mrb[0].mxu0 }
 0x12c   : > { %v400_v55 = vadd.f32 %v921_v54, %v839_v53  ;;  %v394_v56 = vpop.f32.mrb[1].mxu0 }
 0x12d   : > { %v395_v57 = vadd.f32 %v839_v53, %v394_v56 }
 0x12e   : > { %v404_v61 = vmax.f32 %v400_v55, 0.0 }
 0x12f   : > { %v403_v60 = vmax.f32 %v395_v57, 0.0 }
 0x131   : > { %954 = vmatprep.mubr.f32.mxu1 %v403_v60 }
 0x132   : > { %955 = vmatmul.mubr.f32.vlgmr.msra.gmra.mrb[0].mxu1 %v404_v61 }
 0x133   : > { %1098 = vmatpush3.bf16.msra.mxu1 %v1095_v36 }
 0x134   : > { %1100 = vmatprep.subr.bf16.mxu1 %v1099_v62 }
 0x137   : > { %1102 = vmatpush3.bf16.msra.mxu1 %v1099_v62 }
 0x138   : > { %1104 = vmatprep.subr.bf16.mxu1 %v1103_v1 }
 0x13b   : > { %1106 = vmatpush3.bf16.msra.mxu1 %v1103_v1 }
 0x13c   : > { %1108 = vmatprep.subr.bf16.mxu1 %v1107_v4 }
 0x13f   : > { %1110 = vmatpush3.bf16.msra.mxu1 %v1107_v4 }
 0x140   : > { %1112 = vmatprep.subr.bf16.mxu1 %v1111_v7 }
 0x143   : > { %1114 = vmatpush3.bf16.msra.mxu1 %v1111_v7 }
 0x144   : > { %1116 = vmatprep.subr.bf16.mxu1 %v1115_v10 }
 0x147   : > { %1118 = vmatpush3.bf16.msra.mxu1 %v1115_v10 }
 0x148   : > { %1120 = vmatprep.subr.bf16.mxu1 %v1119_v13 }
 0x14b   : > { %1122 = vmatpush3.bf16.msra.mxu1 %v1119_v13 }
 0x14c   : > { %1124 = vmatprep.subr.bf16.mxu1 %v1123_v19 }
 0x14f   : > { %1126 = vmatpush3.bf16.msra.mxu1 %v1123_v19 }
 0x205   : > { %v956_v21 = vpop.f32.mrb[0].mxu1 }
 0x206   : > { %v500_v22 = vadd.f32 %v956_v21, %v842_v20  ;;  %v494_v23 = vpop.f32.mrb[1].mxu1 }
 0x207   : > { %v495_v24 = vadd.f32 %v842_v20, %v494_v23 }
 0x208   : > { %v504_v26 = vmax.f32 %v500_v22, 0.0 }
 0x209   : > { %v503_v25 = vmax.f32 %v495_v24, 0.0 }
 0x20b   : > { %989 = vmatprep.mubr.f32.mxu0 %v503_v25  ;;  %1024 = vmatprep.mubr.f32.mxu1 %v503_v25 }
 0x20c   : > { %990 = vmatmul.mubr.f32.vlgmr.msra.gmra.mrb[2].mxu0 %v504_v26  ;;  %1025 = vmatmul.mubr.f32.vlgmr.msra.gmra.mrb[2].mxu1 %v504_v26 }
 0x2df   : > { %v991_v29 = vpop.f32.mrb[2].mxu0  ;;  %v1026_v30 = vpop.f32.mrb[2].mxu1 }
 0x2e0   : > { %v600_v31 = vadd.f32 %v991_v29, %v843_v27  ;;  %v712_v32 = vadd.f32 %v1026_v30, %v846_v28  ;;  %v594_v33 = vpop.f32.mrb[3].mxu0  ;;  %v706_v34 = vpop.f32.mrb[3].mxu1 }
 0x2e1   : > { %v595_v35 = vadd.f32 %v843_v27, %v594_v33  ;;  %v707_v36 = vadd.f32 %v846_v28, %v706_v34 }
 0x2e2   : > { %v845_v37 = vmul.f32 -1.442695, %v600_v31  ;;  %v848_v38 = vmul.f32 -1.442695, %v712_v32 }
 0x2e3   : > { %v844_v39 = vmul.f32 -1.442695, %v595_v35  ;;  %v847_v40 = vmul.f32 -1.442695, %v707_v36 }
 0x2e4   : > { %1193 = vpow2.f32 %v845_v37 }
 0x2e5   : > { %1195 = vpow2.f32 %v848_v38 }
 0x2e6   : > { %1197 = vpow2.f32 %v844_v39 }
 0x2e7   : > { %1199 = vpow2.f32 %v847_v40 }
 0x2ee   : > { %v1194_v41 = vpop.eup %1193 }
 0x2ef   : > { %v1196_v42 = vpop.eup %1195  ;;  %v610_v43 = vadd.f32 1.0, %v1194_v41 }
 0x2f0   : > { %v1198_v44 = vpop.eup %1197  ;;  %v722_v45 = vadd.f32 1.0, %v1196_v42 }
 0x2f1   : > { %v1200_v46 = vpop.eup %1199  ;;  %1201 = vrcp.f32 %v610_v43  ;;  %v609_v47 = vadd.f32 1.0, %v1198_v44 }
 0x2f2   : > { %1203 = vrcp.f32 %v722_v45  ;;  %v721_v48 = vadd.f32 1.0, %v1200_v46 }
 0x2f3   : > { %1205 = vrcp.f32 %v609_v47 }
 0x2f4   : > { %1207 = vrcp.f32 %v721_v48 }
 0x2fb   : > { %v1202_v49 = vpop.eup %1201 }
 0x2fc   : > { %v1204_v50 = vpop.eup %1203  ;;  %616 = vst [vmem:[%s302_s22 + $0x10] sm:$0xff] %v1202_v49 }
 0x2fd   : > { %v1206_v51 = vpop.eup %1205  ;;  %728 = vst [vmem:[%s302_s22 + $0x18] sm:$0xff] %v1204_v50 }
 0x2fe   : > { %v1208_v52 = vpop.eup %1207  ;;  %615 = vst [vmem:[%s302_s22] sm:$0xff] %v1206_v51 }
 0x2ff   : > { %727 = vst [vmem:[%s302_s22 + $0x8] sm:$0xff] %v1208_v52 }
 0x300   : > { %1278 = shalt.err (!%p1275_p11)
}
 0x301   : > { %s1279_s19 = scalar_lea.hbm %s1535_s9, 512  ;;  %s1283_s13 = scalar_lea.hbm %s1587_s7, 2048 }
 0x302   : > { %p1280_p13 = scmp.ne.s32.totalorder %s1535_s9, %s1279_s19  ;;  %p1284_p6 = scmp.lt.u32.totalorder %s1535_s9, %s1587_s7 }
 0x303   : > { %p1285_p9 = scmp.lt.u32.totalorder %s1283_s13, %s1279_s19  ;;  %p1287_p12 = scmp.lt.u32.totalorder %s1279_s19, %s1535_s9 }
 0x304   : > { %p1281_p0 = pnand %p1280_p13, %p1601_p1 }
 0x305   : > { %p1286_p10 = por %p1285_p9, %p1284_p6 }
 0x306   : > { %p1282_p5 = pneg %p1281_p0 }
 0x307   : > { %p1288_p2 = por %p1287_p12, %p1286_p10 }
 0x309   : > { %p1289_p3 = pnand %p1288_p2, %p1282_p5 }
 0x30b   : > { %1292 = shalt.err (!%p1289_p3)
}
 0x30c   : > { %s1344_s22 = smov 256   ;;  %s1345_s29 = smov 16  }
 0x30d   : > { %1135 = dma.vmem_to_hbm [thread:$0]  (%p1601_p1), %s1537_s23, 512, %s1535_s9, %s1539_s28, %s1344_s22, %s1344_s22, %s1345_s29  }
 0x30e PF: > { %p1152_p4 = scmp.ge.s32.totalorder %s1335_s27, 2  ;;  %s759_s8 = sand.u32 1, %s1323_s24  }
 0x30f   : > { %p1602_p7 = scmp.ne.s32.totalorder %s1593_s12, 0  ;;  %s760_s15 = scalar_lea.sflag [#allocation4], %s759_s8 }
 0x311   : > { %p1145_p8 = pnand %p1152_p4, %p1602_p7 }
 0x313   : > { %1318 = dma.done.wait (!%p1145_p8), %s760_s15, 512  }
 0x314   : > { %1320 = vsyncadd (!%p1145_p8), %s760_s15, 4294966784  ;;  %s1603_s10 = sld [smem:[#allocation11_spill]]  ;;  %p19_p11 = scmp.ge.s32.totalorder %s1411_s30, 6  }
 0x315   : > { %s1604_s24 = smov %s1327_s25  ;;  %s1605_s25 = smov %s1331_s26 }
 0x316   : > { %s1607_s27 = smov %s1411_s30  ;;  %21 = sbr.rel (!%p19_p11) target bundleno = 5 (0x5), region = 92 }
 0x31a   : > { %s1606_s26 = smov %s1603_s10 }
 0x31d   :  { %765 = vsyncpa [#allocation3], 1 }
 0x31e   :  { %767 = vsyncpa [#allocation3 + $0x1], 1 }
 0x31f   :  { %768 = vsyncpa [#allocation6], 1 }
 0x320   :  { %769 = vsyncpa [#allocation4], 1 }
 0x321   :  { %771 = vsyncpa [#allocation4 + $0x1], 1 }

</bundles_post_ra>
